<compile_context>
chip_gen: v6e
topology: v6e:2x2x1
jax: 0.10.0
libtpu: 0.0.40
codegen_flags: <defaults>
</compile_context>

<pallas_src>
import math

import jax
import jax.numpy as jnp
from jax.experimental import pallas as pl
from jax.experimental.pallas import tpu as pltpu


def _round_up(x, m):
    return ((x + m - 1) // m) * m


def _num_embed_kernel(x_ref, wbd_ref, o_ref):
    # x_ref  : (TN, K)   packed rows; col g holds x[row*G + g], col G holds 1.0
    # wbd_ref: (K, Dp)   block-diagonal W (rows 0..G-1) + tiled bias (row G)
    # o_ref  : (TN, Dp)  lane-dense packed output
    y = jnp.dot(x_ref[...], wbd_ref[...],
                preferred_element_type=jnp.float32,
                precision=jax.lax.Precision.HIGHEST)
    o_ref[...] = jnp.maximum(y, 0.0).astype(o_ref.dtype)


def _packing(embed_dim):
    """Rows-per-packed-row G and packed width Dp (always a multiple of 128)."""
    g_base = 128 // math.gcd(embed_dim, 128)
    dp_base = g_base * embed_dim                  # = lcm(D, 128)
    # Grow toward Dp ~ 512 (keeps the lane-padded input tile small relative to
    # the output tile) but keep the contraction dim modest for the MXU.
    k_mult = max(1, min(512 // dp_base, 64 // g_base))
    return k_mult * g_base, k_mult * dp_base


def numerical_embedding(x, weight, bias, *, out_dtype=None,
                        vmem_budget_bytes=20 << 20):
    """x: (..., 1). weight: (D, 1). bias: (D,). Returns (..., D) = ReLU(xW^T+b)."""
    assert x.shape[-1] == 1, "NumericalEmbedding expects trailing dim of size 1"
    D = weight.shape[0]
    assert weight.shape == (D, 1) and bias.shape == (D,)
    out_dtype = jnp.dtype(out_dtype if out_dtype is not None else x.dtype)
    lead_shape = x.shape[:-1]
    n = math.prod(lead_shape)

    G, Dp = _packing(D)
    K = _round_up(G + 1, 8)                       # packed cols + ones column

    # Sublane multiple for the output dtype (f32: 8, bf16: 16, 8-bit: 32).
    sub = {4: 8, 2: 16, 1: 32}.get(out_dtype.itemsize, 8)

    n_rows = pl.cdiv(max(n, 1), G)
    n_rows_pad = _round_up(n_rows, sub)           # pad only to packing boundary

    # Row-tile size from a VMEM budget that counts the lane-padded input tile.
    in_row_bytes = _round_up(K, 128) * 4          # f32 lhs, padded to 128 lanes
    out_row_bytes = Dp * out_dtype.itemsize       # Dp is a multiple of 128
    per_row = 2 * (in_row_bytes + out_row_bytes)  # double-buffered in + out
    tn = max(sub, (vmem_budget_bytes // per_row) // sub * sub)
    tn = min(tn, n_rows_pad)
    grid = pl.cdiv(n_rows_pad, tn)                # boundary tile is masked

    # Pack input rows: (n_rows_pad, K) = [x groups | 1.0 | zero pad].
    x_flat = x.reshape(n).astype(jnp.float32)
    pad = n_rows_pad * G - n
    if pad:
        x_flat = jnp.pad(x_flat, (0, pad))
    cols = [x_flat.reshape(n_rows_pad, G),
            jnp.ones((n_rows_pad, 1), jnp.float32)]
    if K > G + 1:
        cols.append(jnp.zeros((n_rows_pad, K - G - 1), jnp.float32))
    xp = jnp.concatenate(cols, axis=1)

    # Resident (K, Dp) params: block-diagonal W; tiled bias in the ones row.
    w_row = weight.reshape(1, D).astype(jnp.float32)
    b_row = bias.reshape(1, D).astype(jnp.float32)
    wbd = jnp.zeros((K, Dp), jnp.float32)
    wbd = wbd.at[:G, :].set(jnp.kron(jnp.eye(G, dtype=jnp.float32), w_row))
    wbd = wbd.at[G, :].set(jnp.tile(b_row, (1, G))[0])

    out = pl.pallas_call(
        _num_embed_kernel,
        out_shape=jax.ShapeDtypeStruct((n_rows_pad, Dp), out_dtype),
        grid_spec=pltpu.PrefetchScalarGridSpec(
            num_scalar_prefetch=0,
            grid=(grid,),
            in_specs=[
                pl.BlockSpec((tn, K), lambda i: (i, 0)),
                pl.BlockSpec((K, Dp), lambda i: (0, 0)),   # resident params
            ],
            out_specs=pl.BlockSpec((tn, Dp), lambda i: (i, 0)),
        ),
        compiler_params=pltpu.CompilerParams(
            # TODO(synk): try pltpu.CORE_PARALLEL on v7x (2 TCs per chip).
            dimension_semantics=("parallel",),
            vmem_limit_bytes=40 << 20),
    )(xp, wbd)

    # Free row-major unpack; slice away packing padding only when present.
    out = out.reshape(n_rows_pad * G, D)
    if n_rows_pad * G != n:
        out = out[:n]
    return out.reshape(*lead_shape, D)


def _reference(x, weight, bias):
    # Exact f32 elementwise reference (no MXU): ReLU(x * W[:, 0] + b).
    return jnp.maximum(x * weight.reshape(-1) + bias, 0.0)


if __name__ == "__main__":
    key = jax.random.PRNGKey(0)
    ks = jax.random.split(key, 8)

    # --- Main check: batch=2, seq=8, embed_dim=32 (lane packing G=16, Dp=512).
    batch, seq, embed_dim = 2, 8, 32
    weight = jax.random.uniform(ks[0], (embed_dim, 1), jnp.float32, -1.0, 1.0)
    bias = jax.random.uniform(ks[1], (embed_dim,), jnp.float32, -1.0, 1.0)
    x = jax.random.normal(ks[2], (batch, seq, 1), jnp.float32)

    y = jax.block_until_ready(numerical_embedding(x, weight, bias))
    y_ref = _reference(x, weight, bias)
    assert y.shape == (batch, seq, embed_dim)
    assert jnp.allclose(y, y_ref, atol=2e-5, rtol=2e-5)

    # --- D=48 (gcd packing G=8, Dp=384), odd row count; plus bf16 output.
    b2, s2, d2 = 3, 17, 48
    w2 = jax.random.uniform(ks[3], (d2, 1), jnp.float32, -1.0, 1.0)
    bi2 = jax.random.uniform(ks[4], (d2,), jnp.float32, -1.0, 1.0)
    x2 = jax.random.normal(ks[5], (b2, s2, 1), jnp.float32)

    y2 = jax.block_until_ready(numerical_embedding(x2, w2, bi2))
    y2_ref = _reference(x2, w2, bi2)
    assert y2.shape == (b2, s2, d2)
    assert jnp.allclose(y2, y2_ref, atol=2e-5, rtol=2e-5)

    y2b = jax.block_until_ready(
        numerical_embedding(x2, w2, bi2, out_dtype=jnp.bfloat16))
    assert y2b.dtype == jnp.bfloat16
    assert jnp.allclose(y2b.astype(jnp.float32), y2_ref, atol=5e-2, rtol=5e-2)

    # --- Multi-step grid with masked boundary tile (small VMEM budget).
    n3, d3 = 3075, 32
    w3 = jax.random.uniform(ks[6], (d3, 1), jnp.float32, -1.0, 1.0)
    bi3 = jax.random.uniform(ks[7], (d3,), jnp.float32, -1.0, 1.0)
    x3 = jax.random.normal(key, (n3, 1), jnp.float32)

    y3 = jax.block_until_ready(
        numerical_embedding(x3, w3, bi3, vmem_budget_bytes=256 * 1024))
    y3_ref = _reference(x3, w3, bi3)
    assert y3.shape == (n3, d3)
    assert jnp.allclose(y3, y3_ref, atol=2e-5, rtol=2e-5)

    print("KERNEL_OK")
</pallas_src>

<mosaic_0001>
module attributes {stable_mosaic.version = 11 : i64} {
  func.func @_num_embed_kernel(%arg0: i32, %arg1: memref<8x24xf32, #tpu.memory_space<vmem>>, %arg2: memref<24x512xf32, #tpu.memory_space<vmem>>, %arg3: memref<8x512xf32, #tpu.memory_space<vmem>>) attributes {dimension_semantics = [#tpu.dimension_semantics<parallel>], iteration_bounds = array<i64: 1>, scalar_prefetch = 0 : i64, scratch_operands = 0 : i64, tpu.core_type = #tpu.core_type<tc>, window_params = [{transform_indices = @transform_0, window_bounds = array<i64: 8, 24>}, {pipeline_mode = #tpu.pipeline_mode<synchronous>, transform_indices = @transform_1, window_bounds = array<i64: 24, 512>}, {transform_indices = @transform_2, window_bounds = array<i64: 8, 512>}]} {
    %c0 = arith.constant 0 : index
    %c0_0 = arith.constant 0 : index
    %0 = vector.load %arg1[%c0, %c0_0] : memref<8x24xf32, #tpu.memory_space<vmem>>, vector<8x24xf32>
    %c0_1 = arith.constant 0 : index
    %c0_2 = arith.constant 0 : index
    %1 = vector.load %arg2[%c0_1, %c0_2] : memref<24x512xf32, #tpu.memory_space<vmem>>, vector<24x512xf32>
    %cst = arith.constant dense<0.000000e+00> : vector<8x512xf32>
    %2 = tpu.matmul %0, %1, %cst {dimension_numbers = #tpu.dot_dimension_numbers<[1], [0], [0], [1], [0, 0, 1, 1], [], []>, precision = #tpu.contract_precision<fp32>} : vector<8x24xf32>, vector<24x512xf32>, vector<8x512xf32> -> vector<8x512xf32>
    %cst_3 = arith.constant 0.000000e+00 : f32
    %3 = vector.broadcast %cst_3 : f32 to vector<8x512xf32>
    %4 = arith.maximumf %2, %3 : vector<8x512xf32>
    %c0_4 = arith.constant 0 : index
    %c0_5 = arith.constant 0 : index
    %5 = vector.load %arg3[%c0_4, %c0_5] : memref<8x512xf32, #tpu.memory_space<vmem>>, vector<8x512xf32>
    tpu.vector_store %arg3[%c0_4, %c0_5], %4 {strides = array<i32>} : memref<8x512xf32, #tpu.memory_space<vmem>>, vector<8x512xf32>,
    return
  }
  func.func @transform_0(%arg0: i32) -> (i32, i32) {
    %c0_i32 = arith.constant 0 : i32
    %c0_i32_0 = arith.constant 0 : i32
    return %arg0, %c0_i32 : i32, i32
  }
  func.func @transform_1(%arg0: i32) -> (i32, i32) {
    %c0_i32 = arith.constant 0 : i32
    %c0_i32_0 = arith.constant 0 : i32
    %c0_i32_1 = arith.constant 0 : i32
    return %c0_i32, %c0_i32_0 : i32, i32
  }
  func.func @transform_2(%arg0: i32) -> (i32, i32) {
    %c0_i32 = arith.constant 0 : i32
    %c0_i32_0 = arith.constant 0 : i32
    return %arg0, %c0_i32 : i32, i32
  }
}

</mosaic_0001>

<bundles_post_ra>
// kernel: tpu_custom_call.1
= control target key start
LH: loop header
LB: loop body
LE: loop exit
PB: predicated region body
PF: predicated region fallthrough
CT: control target
= control target key end

     0   :  { %7 = vsyncpa [#allocation3], 0  ;;  %s1403_s0 = inlined_call_operand.hbm [shape: f32[8,24], index: 0, kind: input, shape index: {}]   ;;  %s1404_s1 = inlined_call_operand.hbm [shape: f32[24,512], index: 1, kind: input, shape index: {}]   ;;  %s1405_s2 = inlined_call_operand.hbm [shape: f32[8,512], index: 2, kind: output, shape index: {}]  }
   0x1   :  { %8 = vsyncpa [#allocation6], 0 }
   0x2   :  { %9 = vsyncpa [#allocation4], 0  ;;  %s1185_s9 = smov [#allocation2]   ;;  %s1186_s11 = smov [#allocation5]  }
   0x3   :  { %s16_s10 = sshll.u32 %s1185_s9, 4  ;;  %s25_s12 = sshll.u32 %s1186_s11, 4  ;;  %s17_s10 = int_to_ptr.vmem [resolvable:$true] %s16_s10  ;;  %s26_s12 = int_to_ptr.vmem [resolvable:$true] %s25_s12 }
   0x4   :  { %s1127_s13 = scalar_lea.vmem %s17_s10, 128  ;;  %p1132_p1 = scmp.lt.s32.totalorder %s17_s10, %s17_s10 }
   0x5   :  { %p1128_p0 = scmp.ne.s32.totalorder %s17_s10, %s1127_s13  ;;  %p1133_p2 = scmp.lt.s32.totalorder %s1127_s13, %s1127_s13 }
   0x7   :  { %p1134_p3 = por %p1133_p2, %p1132_p1 }
   0x9   :  { %p1135_p4 = pnand %p1134_p3, %p1128_p0 }
   0xb   :  { %1138 = shalt.err (!%p1135_p4)
}
   0xc   :  { %19 = dma.hbm_to_vmem [thread:$0]  %s1403_s0, 128, %s17_s10, [#allocation3]  }
   0xd   :  { %s1147_s16 = scalar_lea.vmem %s26_s12, 1536  ;;  %p1152_p6 = scmp.lt.s32.totalorder %s26_s12, %s26_s12 }
   0xe   :  { %p1148_p5 = scmp.ne.s32.totalorder %s26_s12, %s1147_s16  ;;  %p1153_p7 = scmp.lt.s32.totalorder %s1147_s16, %s1147_s16 }
  0x10   :  { %p1154_p8 = por %p1153_p7, %p1152_p6 }
  0x12   :  { %p1155_p9 = pnand %p1154_p8, %p1148_p5 }
  0x14   :  { %1158 = shalt.err (!%p1155_p9)
}
  0x15   :  { %s1187_s17 = smov 512   ;;  %s1188_s18 = smov 32  }
  0x16   :  { %31 = dma.hbm_to_vmem [thread:$0]  %s1404_s1, 1536, %s26_s12, [#allocation6], %s1187_s17, %s1187_s17, %s1188_s18  }
  0x17   :  { %1179 = dma.done.wait [#allocation3], 128  }
  0x18   :  { %1180 = vsyncadd [#allocation3], 4294967168 }
  0x19   :  { %1181 = dma.done.wait [#allocation6], 1536  }
  0x1a   :  { %1182 = vsyncadd [#allocation6], 4294965760  ;;  %v1189_v0 = vmov 0.0   ;;  %v48_v1 = vld [vmem:[#allocation5 + $0x48] sm:$0xff]  ;;  %v47_v2 = vld [vmem:[#allocation5 + $0x40] sm:$0xff]  ;;  %vm51_vm0 = vcmask 195584  }
  0x1b   :  { %125 = vmatprep.mubr.f32.mxu0 %v1189_v0  ;;  %231 = vmatprep.mubr.f32.mxu1 %v1189_v0  ;;  %v44_v3 = vld [vmem:[#allocation5 + $0x28] sm:$0xff]  ;;  %v1214_v4 = vand.u32 4294901760, %v48_v1  ;;  %v1216_v5 = vand.u32 4294901760, %v47_v2  ;;  %v43_v7 = vld [vmem:[#allocation5 + $0x20] sm:$0xff]  ;;  %v38_v13 = vld [vmem:[#allocation2] sm:$0xff]  ;;  %s1190_s0 = smov [#allocation7]  }
  0x1c   :  { %v1218_v6 = vand.u32 4294901760, %v44_v3  ;;  %v40_v8 = vld [vmem:[#allocation5 + $0x8] sm:$0xff]  ;;  %v39_v9 = vld [vmem:[#allocation5] sm:$0xff]  ;;  %v1220_v10 = vand.u32 4294901760, %v43_v7  ;;  %v53_v17 = vsel %vm51_vm0, %v38_v13, 0  ;;  %v50_v42 = vld [vmem:[#allocation5 + $0x58] sm:$0xff] }
  0x1d   :  { %v1222_v11 = vand.u32 4294901760, %v40_v8  ;;  %v1224_v12 = vand.u32 4294901760, %v39_v9  ;;  %82 = vmatprep.subr.mxu0 %v1214_v4  ;;  %v1228_v14 = vsub.f32 %v48_v1, %v1214_v4  ;;  %v1231_v15 = vsub.f32 %v47_v2, %v1216_v5  ;;  %v49_v45 = vld [vmem:[#allocation5 + $0x50] sm:$0xff]  ;;  %v46_v46 = vld [vmem:[#allocation5 + $0x38] sm:$0xff]  ;;  %s1103_s1 = sshll.u32 %s1190_s0, 4  ;;  %s1104_s1 = int_to_ptr.vmem [resolvable:$true] %s1103_s1 }
  0x1e   :  { %v1234_v16 = vsub.f32 %v44_v3, %v1218_v6  ;;  %84 = vmatpush1.msra.mxu0 %v1216_v5  ;;  %v1237_v18 = vand.u32 4294901760, %v53_v17  ;;  %v1240_v19 = vsub.f32 %v43_v7, %v1220_v10  ;;  %v1282_v47 = vand.u32 4294901760, %v50_v42  ;;  %v45_v49 = vld [vmem:[#allocation5 + $0x30] sm:$0xff]  ;;  %v42_v51 = vld [vmem:[#allocation5 + $0x18] sm:$0xff]  ;;  %s1159_s21 = scalar_lea.vmem %s1104_s1, 512  ;;  %p1164_p11 = scmp.lt.s32.totalorder %s1104_s1, %s1104_s1 }
  0x1f   :  { %v1243_v20 = vsub.f32 %v40_v8, %v1222_v11  ;;  %v1246_v21 = vsub.f32 %v39_v9, %v1224_v12  ;;  %86 = vmatprep.subr.mxu0 %v1218_v6  ;;  %v165_v22 = vand.u32 4294901760, %v1228_v14  ;;  %v171_v23 = vand.u32 4294901760, %v1231_v15  ;;  %v41_v52 = vld [vmem:[#allocation5 + $0x10] sm:$0xff]  ;;  %p1160_p10 = scmp.ne.s32.totalorder %s1104_s1, %s1159_s21  ;;  %p1165_p12 = scmp.lt.s32.totalorder %s1159_s21, %s1159_s21 }
  0x20   :  { %v177_v24 = vand.u32 4294901760, %v1234_v16  ;;  %88 = vmatpush1.msra.mxu0 %v1220_v10  ;;  %v1254_v25 = vsub.f32 %v53_v17, %v1237_v18  ;;  %v183_v26 = vand.u32 4294901760, %v1240_v19  ;;  %v1285_v48 = vand.u32 4294901760, %v49_v45 }
  0x21   :  { %v189_v27 = vand.u32 4294901760, %v1243_v20  ;;  %v195_v28 = vand.u32 4294901760, %v1246_v21  ;;  %90 = vmatprep.subr.mxu0 %v1222_v11  ;;  %v166_v29 = vsub.f32 %v1228_v14, %v165_v22  ;;  %v172_v30 = vsub.f32 %v1231_v15, %v171_v23  ;;  %p1166_p13 = por %p1165_p12, %p1164_p11 }
  0x22   :  { %v178_v31 = vsub.f32 %v1234_v16, %v177_v24  ;;  %92 = vmatpush1.msra.mxu0 %v1224_v12  ;;  %v1265_v32 = vand.u32 4294901760, %v1254_v25  ;;  %v184_v33 = vsub.f32 %v1240_v19, %v183_v26  ;;  %v1288_v50 = vand.u32 4294901760, %v46_v46 }
  0x23   :  { %v190_v34 = vsub.f32 %v1243_v20, %v189_v27  ;;  %v196_v35 = vsub.f32 %v1246_v21, %v195_v28  ;;  %v167_v36 = vand.u32 4294901760, %v166_v29  ;;  %v173_v37 = vand.u32 4294901760, %v172_v30  ;;  %267 = vmatprep.subr.mxu0 %v1228_v14  ;;  %p1167_p0 = pnand %p1166_p13, %p1160_p10 }
  0x24   :  { %v179_v38 = vand.u32 4294901760, %v178_v31  ;;  %v129_v39 = vsub.f32 %v1254_v25, %v1265_v32  ;;  %v185_v40 = vand.u32 4294901760, %v184_v33  ;;  %v1294_v53 = vand.u32 4294901760, %v45_v49 }
  0x25   :  { %168 = vmatprep.subr.mxu1 %v167_v36  ;;  %v191_v41 = vand.u32 4294901760, %v190_v34  ;;  %v197_v44 = vand.u32 4294901760, %v196_v35  ;;  %v1297_v54 = vsub.f32 %v50_v42, %v1282_v47  ;;  %v1302_v55 = vsub.f32 %v49_v45, %v1285_v48 }
  0x26   :  { %174 = vmatpush1.msra.mxu1 %v173_v37  ;;  %v1279_v43 = vand.u32 4294901760, %v129_v39  ;;  %v1304_v56 = vand.u32 4294901760, %v42_v51  ;;  %v1308_v57 = vand.u32 4294901760, %v41_v52  ;;  %v1311_v58 = vsub.f32 %v46_v46, %v1288_v50 }
  0x27   :  { %180 = vmatprep.subr.mxu1 %v179_v38  ;;  %v1316_v59 = vsub.f32 %v45_v49, %v1294_v53  ;;  %v682_v60 = vand.u32 4294901760, %v1297_v54  ;;  %v688_v61 = vand.u32 4294901760, %v1302_v55 }
  0x28   :  { %131 = vmatmul.mubr.f32.vlgmr.msra.gmra.mxu0 %v1279_v43  ;;  %186 = vmatpush1.msra.mxu1 %v185_v40  ;;  %v1322_v62 = vsub.f32 %v42_v51, %v1304_v56  ;;  %v1327_v63 = vsub.f32 %v41_v52, %v1308_v57  ;;  %v694_v1 = vand.u32 4294901760, %v1311_v58 }
  0x29   :  { %270 = vmatpush1.msra.mxu0 %v1231_v15  ;;  %192 = vmatprep.subr.mxu1 %v191_v41  ;;  %v683_v2 = vsub.f32 %v1297_v54, %v682_v60  ;;  %v700_v3 = vand.u32 4294901760, %v1316_v59  ;;  %v689_v7 = vsub.f32 %v1302_v55, %v688_v61 }
  0x2a   :  { %273 = vmatprep.subr.mxu0 %v1234_v16  ;;  %198 = vmatpush1.msra.mxu1 %v197_v44  ;;  %v706_v8 = vand.u32 4294901760, %v1322_v62  ;;  %v712_v9 = vand.u32 4294901760, %v1327_v63 }
  0x2b   :  { %276 = vmatpush1.msra.mxu0 %v1240_v19  ;;  %233 = vmatmul.mubr.f32.vlgmr.msra.gmra.mxu1 %v1237_v18  ;;  %v684_v13 = vand.u32 4294901760, %v683_v2  ;;  %v701_v14 = vsub.f32 %v1316_v59, %v700_v3 }
  0x2c   :  { %279 = vmatprep.subr.mxu0 %v1243_v20  ;;  %351 = vmatprep.subr.mxu1 %v1214_v4  ;;  %v707_v15 = vsub.f32 %v1322_v62, %v706_v8  ;;  %v713_v16 = vsub.f32 %v1327_v63, %v712_v9 }
  0x2d   :  { %282 = vmatpush1.msra.mxu0 %v1246_v21  ;;  %315 = vmatprep.mubr.f32.mxu0 %v1189_v0 }
  0x2e   :  { %353 = vmatpush1.msra.mxu1 %v1216_v5  ;;  %318 = vmatmul.mubr.f32.vlgmr.msra.gmra.mxu0 %v1254_v25 }
  0x2f   :  { %355 = vmatprep.subr.mxu1 %v1218_v6  ;;  %433 = vmatprep.subr.mxu0 %v165_v22 }
  0x30   :  { %357 = vmatpush1.msra.mxu1 %v1220_v10  ;;  %437 = vmatpush1.msra.mxu0 %v171_v23 }
  0x31   :  { %359 = vmatprep.subr.mxu1 %v1222_v11  ;;  %441 = vmatprep.subr.mxu0 %v177_v24 }
  0x32   :  { %361 = vmatpush1.msra.mxu1 %v1224_v12  ;;  %394 = vmatprep.mubr.f32.mxu1 %v1189_v0 }
  0x33   :  { %445 = vmatpush1.msra.mxu0 %v183_v26  ;;  %398 = vmatmul.mubr.f32.vlgmr.msra.gmra.mxu1 %v1265_v32 }
  0x34   :  { %449 = vmatprep.subr.mxu0 %v189_v27  ;;  %521 = vmatprep.subr.mxu1 %v1214_v4  ;;  %v695_v4 = vsub.f32 %v1311_v58, %v694_v1 }
  0x35   :  { %453 = vmatpush1.msra.mxu0 %v195_v28  ;;  %486 = vmatprep.mubr.f32.mxu0 %v1189_v0 }
  0x36   :  { %523 = vmatpush1.msra.mxu1 %v1216_v5  ;;  %488 = vmatmul.mubr.f32.vlgmr.msra.gmra.mxu0 %v1237_v18  ;;  %v690_v5 = vand.u32 4294901760, %v689_v7 }
  0x37   :  { %525 = vmatprep.subr.mxu1 %v1218_v6  ;;  %599 = vmatprep.subr.mxu0 %v1282_v47  ;;  %v696_v6 = vand.u32 4294901760, %v695_v4 }
  0x38   :  { %527 = vmatpush1.msra.mxu1 %v1220_v10  ;;  %601 = vmatpush1.msra.mxu0 %v1285_v48  ;;  %v702_v10 = vand.u32 4294901760, %v701_v14 }
  0x39   :  { %529 = vmatprep.subr.mxu1 %v1222_v11  ;;  %603 = vmatprep.subr.mxu0 %v1288_v50  ;;  %v708_v11 = vand.u32 4294901760, %v707_v15 }
  0x3a   :  { %531 = vmatpush1.msra.mxu1 %v1224_v12  ;;  %564 = vmatprep.mubr.f32.mxu1 %v1189_v0  ;;  %v714_v12 = vand.u32 4294901760, %v713_v16 }
  0x3b   :  { %605 = vmatpush1.msra.mxu0 %v1294_v53  ;;  %566 = vmatmul.mubr.f32.vlgmr.msra.gmra.mxu1 %v1237_v18 }
  0x3c   :  { %607 = vmatprep.subr.mxu0 %v1304_v56  ;;  %685 = vmatprep.subr.mxu1 %v684_v13 }
  0x3d   :  { %609 = vmatpush1.msra.mxu0 %v1308_v57  ;;  %691 = vmatpush1.msra.mxu1 %v690_v5 }
  0x3e   :  { %642 = vmatprep.mubr.f32.mxu0 %v1189_v0  ;;  %697 = vmatprep.subr.mxu1 %v696_v6 }
  0x3f   :  { %784 = vmatprep.subr.mxu0 %v1297_v54  ;;  %648 = vmatmul.mubr.f32.vlgmr.msra.gmra.mxu0 %v1279_v43 }
  0x40   :  { %703 = vmatpush1.msra.mxu1 %v702_v10  ;;  %787 = vmatpush1.msra.mxu0 %v1302_v55 }
  0x41   :  { %709 = vmatprep.subr.mxu1 %v708_v11  ;;  %790 = vmatprep.subr.mxu0 %v1311_v58 }
  0x42   :  { %715 = vmatpush1.msra.mxu1 %v714_v12  ;;  %748 = vmatprep.mubr.f32.mxu1 %v1189_v0 }
  0x43   :  { %793 = vmatpush1.msra.mxu0 %v1316_v59  ;;  %750 = vmatmul.mubr.f32.vlgmr.msra.gmra.mxu1 %v1237_v18 }
  0x44   :  { %796 = vmatprep.subr.mxu0 %v1322_v62  ;;  %868 = vmatprep.subr.mxu1 %v1282_v47 }
  0x45   :  { %799 = vmatpush1.msra.mxu0 %v1327_v63  ;;  %832 = vmatprep.mubr.f32.mxu0 %v1189_v0 }
  0x46   :  { %870 = vmatpush1.msra.mxu1 %v1285_v48  ;;  %835 = vmatmul.mubr.f32.vlgmr.msra.gmra.mxu0 %v1254_v25 }
  0x47   :  { %872 = vmatprep.subr.mxu1 %v1288_v50  ;;  %950 = vmatprep.subr.mxu0 %v682_v60 }
  0x48   :  { %874 = vmatpush1.msra.mxu1 %v1294_v53  ;;  %954 = vmatpush1.msra.mxu0 %v688_v61 }
  0x49   :  { %876 = vmatprep.subr.mxu1 %v1304_v56  ;;  %958 = vmatprep.subr.mxu0 %v694_v1 }
  0x4a   :  { %878 = vmatpush1.msra.mxu1 %v1308_v57  ;;  %911 = vmatprep.mubr.f32.mxu1 %v1189_v0 }
  0x4b   :  { %962 = vmatpush1.msra.mxu0 %v700_v3  ;;  %915 = vmatmul.mubr.f32.vlgmr.msra.gmra.mxu1 %v1265_v32 }
  0x4c   :  { %966 = vmatprep.subr.mxu0 %v706_v8  ;;  %1038 = vmatprep.subr.mxu1 %v1282_v47 }
  0x4d   :  { %970 = vmatpush1.msra.mxu0 %v712_v9  ;;  %1003 = vmatprep.mubr.f32.mxu0 %v1189_v0 }
  0x4e   :  { %1040 = vmatpush1.msra.mxu1 %v1285_v48  ;;  %1005 = vmatmul.mubr.f32.vlgmr.msra.gmra.mxu0 %v1237_v18 }
  0x4f   :  { %1042 = vmatprep.subr.mxu1 %v1288_v50  ;;  %1081 = vmatprep.mubr.f32.mxu1 %v1189_v0 }
  0x50   :  { %1044 = vmatpush1.msra.mxu1 %v1294_v53 }
  0x51   :  { %1046 = vmatprep.subr.mxu1 %v1304_v56 }
  0x52   :  { %1048 = vmatpush1.msra.mxu1 %v1308_v57 }
  0x53   :  { %1083 = vmatmul.mubr.f32.vlgmr.msra.gmra.mxu1 %v1237_v18 }
  0xe8   :  { %v132_v17 = vpop.f32.mrf.mxu0 }
  0xea   :  { %v134_v19 = vpop.f32.mrf.mxu0 }
  0xeb   :  { %v234_v20 = vpop.f32.mrf.mxu1 }
  0xec   :  { %v235_v23 = vadd.f32 %v234_v20, %v132_v17 }
  0xed   :  { %v236_v21 = vpop.f32.mrf.mxu1 }
  0xee   :  { %v319_v22 = vpop.f32.mrf.mxu0  ;;  %v237_v24 = vadd.f32 %v236_v21, %v134_v19 }
  0xef   :  { %v320_v27 = vadd.f32 %v319_v22, %v235_v23 }
  0xf0   :  { %v321_v25 = vpop.f32.mrf.mxu0 }
  0xf1   :  { %v322_v0 = vadd.f32 %v321_v25, %v237_v24 }
  0xf3   :  { %v399_v26 = vpop.f32.mrf.mxu1 }
  0xf4   :  { %v400_v29 = vadd.f32 %v399_v26, %v320_v27 }
  0xf5   :  { %v401_v28 = vpop.f32.mrf.mxu1 }
  0xf6   :  { %v489_v30 = vpop.f32.mrf.mxu0  ;;  %v402_v31 = vadd.f32 %v401_v28, %v322_v0 }
  0xf7   :  { %v490_v33 = vadd.f32 %v489_v30, %v400_v29 }
  0xf8   :  { %v491_v32 = vpop.f32.mrf.mxu0 }
  0xf9   :  { %v492_v35 = vadd.f32 %v491_v32, %v402_v31 }
  0xfb   :  { %v567_v34 = vpop.f32.mrf.mxu1 }
  0xfc   :  { %v568_v18 = vadd.f32 %v567_v34, %v490_v33 }
  0xfd   :  { %v569_v36 = vpop.f32.mrf.mxu1 }
  0xfe   :  { %v1089_v37 = vmax.f32 %v568_v18, 0.0  ;;  %v570_v38 = vadd.f32 %v569_v36, %v492_v35 }
  0xff   :  { %v649_v39 = vpop.f32.mrf.mxu0 }
 0x100   :  { %1093 = vst [vmem:[#allocation7] sm:$0xff] %v1089_v37  ;;  %v1090_v40 = vmax.f32 %v570_v38, 0.0 }
 0x101   :  { %v651_v41 = vpop.f32.mrf.mxu0 }
 0x102   :  { %1094 = vst [vmem:[#allocation7 + $0x8] sm:$0xff] %v1090_v40 }
 0x103   :  { %v751_v42 = vpop.f32.mrf.mxu1 }
 0x104   :  { %v752_v45 = vadd.f32 %v751_v42, %v649_v39 }
 0x105   :  { %v753_v43 = vpop.f32.mrf.mxu1 }
 0x106   :  { %v836_v44 = vpop.f32.mrf.mxu0  ;;  %v754_v46 = vadd.f32 %v753_v43, %v651_v41 }
 0x107   :  { %v837_v49 = vadd.f32 %v836_v44, %v752_v45 }
 0x108   :  { %v838_v47 = vpop.f32.mrf.mxu0 }
 0x109   :  { %v839_v51 = vadd.f32 %v838_v47, %v754_v46 }
 0x10b   :  { %v916_v48 = vpop.f32.mrf.mxu1 }
 0x10c   :  { %v917_v52 = vadd.f32 %v916_v48, %v837_v49 }
 0x10d   :  { %v918_v50 = vpop.f32.mrf.mxu1 }
 0x10e   :  { %v1006_v53 = vpop.f32.mrf.mxu0  ;;  %v919_v54 = vadd.f32 %v918_v50, %v839_v51 }
 0x10f   :  { %v1007_v56 = vadd.f32 %v1006_v53, %v917_v52 }
 0x110   :  { %v1008_v55 = vpop.f32.mrf.mxu0 }
 0x111   :  { %v1009_v58 = vadd.f32 %v1008_v55, %v919_v54 }
 0x113   :  { %v1084_v57 = vpop.f32.mrf.mxu1 }
 0x114   :  { %v1085_v59 = vadd.f32 %v1084_v57, %v1007_v56 }
 0x115   :  { %v1086_v60 = vpop.f32.mrf.mxu1 }
 0x116   :  { %v1091_v61 = vmax.f32 %v1085_v59, 0.0  ;;  %v1087_v62 = vadd.f32 %v1086_v60, %v1009_v58 }
 0x118   :  { %1095 = vst [vmem:[#allocation7 + $0x10] sm:$0xff] %v1091_v61  ;;  %v1092_v63 = vmax.f32 %v1087_v62, 0.0 }
 0x11a   :  { %1096 = vst [vmem:[#allocation7 + $0x18] sm:$0xff] %v1092_v63 }
 0x11b   :  { %1170 = shalt.err (!%p1167_p0)
}
 0x11c   :  { %1106 = dma.vmem_to_hbm [thread:$0]  %s1104_s1, 512, %s1405_s2, [#allocation4]  }
 0x11d   :  { %1183 = dma.done.wait [#allocation4], 512  }
 0x11e   :  { %1184 = vsyncadd [#allocation4], 4294966784 }
 0x11f   :  { %1110 = vsyncpa [#allocation3], 1 }
 0x120   :  { %1111 = vsyncpa [#allocation6], 1 }
 0x121   :  { %1112 = vsyncpa [#allocation4], 1 }

</bundles_post_ra>
